<compile_context>
chip_gen: v6e
topology: v6e:2x2x1
jax: 0.10.0
libtpu: 0.0.40
codegen_flags: <defaults>
</compile_context>

<pallas_src>
import functools

import jax
import jax.numpy as jnp
from jax.experimental import pallas as pl
from jax.experimental.pallas import tpu as pltpu


def _nce_vsc_kernel(
    inv_b,            # python float: 1 / batch
    temp_ref,         # (1, 1) f32 SMEM      : learnable log-temperature
    vis_ref,          # (TM, D)              : vis rows of this row tile
    text_ref,         # (TN, D)              : text rows of this column tile
    cap_ref,          # (TN, D)              : cap rows of this column tile
    text_d_ref,       # (TM, D)              : text rows aligned with the row tile (diag)
    cap_d_ref,        # (TM, D)              : cap rows aligned with the row tile  (diag)
    out_ref,          # (1, 1) f32           : scalar loss output
    m34_ref,          # (TM, 1) f32 scratch  : shared running row-max for losses 3/4
    es1_ref,          # (TM, 1) f32 scratch  : running row-sum of exp(s1 - m)
    es2_ref,          # (TM, 1) f32 scratch  : running row-sum of exp(s2 - m)
    cm1_ref,          # (NJ, 1, TN) f32      : running column-max of s1 (loss 1)
    cs1_ref,          # (NJ, 1, TN) f32      : running column-sum of exp(s1 - cm1)
    cm2_ref,          # (NJ, 1, TN) f32      : running column-max of s2 (loss 2)
    cs2_ref,          # (NJ, 1, TN) f32      : running column-sum of exp(s2 - cm2)
    acc_ref,          # (1, 1) f32 scratch   : running scalar partial loss
):
    i = pl.program_id(0)
    j = pl.program_id(1)
    ni = pl.num_programs(0)
    nj = pl.num_programs(1)
    f32 = jnp.float32

    # ---- init persistent accumulators once, at the very first grid step ----
    @pl.when(jnp.logical_and(i == 0, j == 0))
    def _init_global():
        acc_ref[...] = jnp.zeros_like(acc_ref)
        cm1_ref[...] = jnp.full_like(cm1_ref, -jnp.inf)
        cm2_ref[...] = jnp.full_like(cm2_ref, -jnp.inf)
        cs1_ref[...] = jnp.zeros_like(cs1_ref)
        cs2_ref[...] = jnp.zeros_like(cs2_ref)

    # ---- reset the per-row-tile accumulators at the start of each column sweep ----
    @pl.when(j == 0)
    def _init_rows():
        m34_ref[...] = jnp.full_like(m34_ref, -jnp.inf)
        es1_ref[...] = jnp.zeros_like(es1_ref)
        es2_ref[...] = jnp.zeros_like(es2_ref)

    # ---- logits tile: fold exp(temp) into the vis operand once ----
    scale = jnp.exp(temp_ref[0, 0])
    vis = vis_ref[...] * scale.astype(vis_ref.dtype)              # (TM, D)
    dn = (((1,), (1,)), ((), ()))                                  # contract feature dim
    s1 = jax.lax.dot_general(vis, text_ref[...], dn, preferred_element_type=f32)
    s2 = jax.lax.dot_general(vis, cap_ref[...], dn, preferred_element_type=f32)

    # ---- losses 1/2: online LSE over ROWS, one accumulator slot per column block ----
    cmax1 = jnp.max(s1, axis=0, keepdims=True)                     # (1, TN)
    old1 = cm1_ref[j]
    new1 = jnp.maximum(old1, cmax1)
    cs1_ref[j] = (cs1_ref[j] * jnp.exp(old1 - new1)
                  + jnp.sum(jnp.exp(s1 - new1), axis=0, keepdims=True))
    cm1_ref[j] = new1

    cmax2 = jnp.max(s2, axis=0, keepdims=True)
    old2 = cm2_ref[j]
    new2 = jnp.maximum(old2, cmax2)
    cs2_ref[j] = (cs2_ref[j] * jnp.exp(old2 - new2)
                  + jnp.sum(jnp.exp(s2 - new2), axis=0, keepdims=True))
    cm2_ref[j] = new2

    # ---- losses 3/4: one shared online LSE over the columns of [s1 | s2] ----
    rmax = jnp.maximum(jnp.max(s1, axis=1, keepdims=True),
                       jnp.max(s2, axis=1, keepdims=True))         # (TM, 1)
    m_old = m34_ref[...]
    m_new = jnp.maximum(m_old, rmax)
    corr = jnp.exp(m_old - m_new)                                  # == 0 at j == 0
    es1_ref[...] = es1_ref[...] * corr + jnp.sum(jnp.exp(s1 - m_new), axis=1, keepdims=True)
    es2_ref[...] = es2_ref[...] * corr + jnp.sum(jnp.exp(s2 - m_new), axis=1, keepdims=True)
    m34_ref[...] = m_new

    # ---- finalize this row tile once its column sweep is complete ----
    @pl.when(j == nj - 1)
    def _finalize_rows():
        # Positive logits = diag(s1)/diag(s2), as row-wise dot products (no BxB mask).
        v32 = vis.astype(f32)
        d1 = jnp.sum(v32 * text_d_ref[...].astype(f32), axis=1, keepdims=True)   # (TM, 1)
        d2 = jnp.sum(v32 * cap_d_ref[...].astype(f32), axis=1, keepdims=True)
        m = m34_ref[...]
        tot = es1_ref[...] + es2_ref[...]
        # CE([s1_pos, s1_neg, s2_neg], 0): LSE over full s1-row + s2-row minus the s2 diag.
        lse3 = m + jnp.log(tot - jnp.exp(d2 - m))
        # CE([s2_pos, s1_neg, s2_neg], 0): same with the s1 diag removed.
        lse4 = m + jnp.log(tot - jnp.exp(d1 - m))
        # Per-row contribution: (lse3 - d1) + (lse4 - d2) plus -d1/-d2 from losses 1/2.
        acc_ref[...] += jnp.sum(lse3 + lse4 - 2.0 * (d1 + d2), keepdims=True)

    # ---- emit the scalar loss on the very last grid step ----
    @pl.when(jnp.logical_and(i == ni - 1, j == nj - 1))
    def _finalize():
        col1 = jnp.sum(cm1_ref[...] + jnp.log(cs1_ref[...]))       # sum of column LSEs of s1
        col2 = jnp.sum(cm2_ref[...] + jnp.log(cs2_ref[...]))       # sum of column LSEs of s2
        out_ref[...] = (acc_ref[...] + col1 + col2) * inv_b


def _pick_row_tile(b, target=256):
    if b <= target:
        return b
    for t in (target, 128, 64, 32, 16, 8):
        if b % t == 0:
            return t
    return b


def _pick_col_tile(b, target=256):
    if b <= target:
        return b
    for t in (target, 128):        # keep column tiles lane-aligned (multiple of 128)
        if b % t == 0:
            return t
    return b


def nce_learnable_temp_loss_vsc(vis_feat, text_feat, img_feat, cap_feat, temp,
                                *, block_rows=None, block_cols=None,
                                matmul_dtype=None):
    """Pallas implementation of NCELearnableTempLoss_vsc.forward.

    img_feat is accepted (PyTorch signature) but unused by the loss.
    matmul_dtype=jnp.bfloat16 optionally casts the features for the native
    bf16 MXU datapath (accumulation stays f32).  Returns a scalar f32 loss.
    """
    del img_feat  # unused by the reference forward
    b, d = vis_feat.shape
    assert text_feat.shape == (b, d) and cap_feat.shape == (b, d)
    assert text_feat.shape[0] == cap_feat.shape[0]

    if matmul_dtype is not None:
        vis_feat = vis_feat.astype(matmul_dtype)
        text_feat = text_feat.astype(matmul_dtype)
        cap_feat = cap_feat.astype(matmul_dtype)

    tm = block_rows if block_rows is not None else _pick_row_tile(b)
    tn = block_cols if block_cols is not None else _pick_col_tile(b)
    assert b % tm == 0 and b % tn == 0, (b, tm, tn)
    ni, nj = b // tm, b // tn

    temp_arr = jnp.asarray(temp, dtype=jnp.float32).reshape(1, 1)
    kernel = functools.partial(_nce_vsc_kernel, 1.0 / b)

    out = pl.pallas_call(
        kernel,
        out_shape=jax.ShapeDtypeStruct((1, 1), jnp.float32),
        grid_spec=pltpu.PrefetchScalarGridSpec(
            num_scalar_prefetch=0,
            grid=(ni, nj),
            in_specs=[
                pl.BlockSpec(memory_space=pltpu.MemorySpace.SMEM),     # temp (scalar)
                pl.BlockSpec((tm, d), lambda i, j: (i, 0)),            # vis rows, tile i
                pl.BlockSpec((tn, d), lambda i, j: (j, 0)),            # text rows, tile j
                pl.BlockSpec((tn, d), lambda i, j: (j, 0)),            # cap rows, tile j
                pl.BlockSpec((tm, d), lambda i, j: (i, 0)),            # text rows, tile i (diag)
                pl.BlockSpec((tm, d), lambda i, j: (i, 0)),            # cap rows, tile i (diag)
            ],
            out_specs=pl.BlockSpec((1, 1), lambda i, j: (0, 0)),
            scratch_shapes=[
                pltpu.VMEM((tm, 1), jnp.float32),        # m34
                pltpu.VMEM((tm, 1), jnp.float32),        # es1
                pltpu.VMEM((tm, 1), jnp.float32),        # es2
                pltpu.VMEM((nj, 1, tn), jnp.float32),    # cm1
                pltpu.VMEM((nj, 1, tn), jnp.float32),    # cs1
                pltpu.VMEM((nj, 1, tn), jnp.float32),    # cm2
                pltpu.VMEM((nj, 1, tn), jnp.float32),    # cs2
                pltpu.VMEM((1, 1), jnp.float32),         # acc (scalar partial loss)
            ],
        ),
        compiler_params=pltpu.CompilerParams(
            dimension_semantics=("arbitrary", "arbitrary")),
    )(temp_arr, vis_feat, text_feat, cap_feat, text_feat, cap_feat)
    return out[0, 0]


def _reference_loss(vis, text, cap, temp):
    """Pure-JAX re-implementation of the PyTorch forward (validation only)."""
    hi = jax.lax.Precision.HIGHEST
    scale = jnp.exp(temp)
    s1 = jnp.matmul(vis, text.T, precision=hi) * scale
    s2 = jnp.matmul(vis, cap.T, precision=hi) * scale
    b = s1.shape[0]
    eye = jnp.eye(b, dtype=bool)
    d1 = jnp.diagonal(s1)
    d2 = jnp.diagonal(s2)
    loss1 = jnp.mean(jax.nn.logsumexp(s1, axis=0) - d1)            # CE(t2v,   arange)
    loss2 = jnp.mean(jax.nn.logsumexp(s2, axis=0) - d2)            # CE(t2v_2, arange)
    s1_off = jnp.where(eye, -jnp.inf, s1)
    s2_off = jnp.where(eye, -jnp.inf, s2)
    cat3 = jnp.concatenate([d1[:, None], s1_off, s2_off], axis=1)
    cat4 = jnp.concatenate([d2[:, None], s1_off, s2_off], axis=1)
    loss3 = jnp.mean(jax.nn.logsumexp(cat3, axis=1) - d1)          # CE([pos,  neg, neg2], 0)
    loss4 = jnp.mean(jax.nn.logsumexp(cat4, axis=1) - d2)          # CE([pos2, neg, neg2], 0)
    return loss1 + loss2 + loss3 + loss4


def _l2_normalize(x):
    return x / jnp.linalg.norm(x, axis=-1, keepdims=True)


if __name__ == "__main__":
    keys = jax.random.split(jax.random.PRNGKey(0), 8)
    temp = jnp.float32(jnp.log(1.0 / 0.07))   # standard CLIP-style learnable temp value

    # --- small case (shapes implied by the module: [batch, dim] features) ---
    B, D = 8, 32
    vis = _l2_normalize(jax.random.normal(keys[0], (B, D), jnp.float32))
    text = _l2_normalize(jax.random.normal(keys[1], (B, D), jnp.float32))
    img = _l2_normalize(jax.random.normal(keys[2], (B, D), jnp.float32))   # unused by the loss
    cap = _l2_normalize(jax.random.normal(keys[3], (B, D), jnp.float32))

    loss_small = nce_learnable_temp_loss_vsc(vis, text, img, cap, temp)
    jax.block_until_ready(loss_small)
    ref_small = _reference_loss(vis, text, cap, temp)
    assert jnp.allclose(loss_small, ref_small, rtol=1e-3, atol=5e-3), (loss_small, ref_small)

    # --- larger case: exercises the 2x2 tiled grid and the online-LSE updates ---
    B2, D2 = 256, 128
    vis2 = _l2_normalize(jax.random.normal(keys[4], (B2, D2), jnp.float32))
    text2 = _l2_normalize(jax.random.normal(keys[5], (B2, D2), jnp.float32))
    img2 = _l2_normalize(jax.random.normal(keys[6], (B2, D2), jnp.float32))
    cap2 = _l2_normalize(jax.random.normal(keys[7], (B2, D2), jnp.float32))

    loss_big = nce_learnable_temp_loss_vsc(vis2, text2, img2, cap2, temp,
                                           block_rows=128, block_cols=128)
    jax.block_until_ready(loss_big)
    ref_big = _reference_loss(vis2, text2, cap2, temp)
    assert jnp.allclose(loss_big, ref_big, rtol=1e-3, atol=5e-3), (loss_big, ref_big)

    print("KERNEL_OK")
</pallas_src>

<mosaic_0001>
module attributes {stable_mosaic.version = 11 : i64} {
  func.func @_nce_vsc_kernel(%arg0: i32, %arg1: i32, %arg2: memref<1x1xf32, #tpu.memory_space<smem>>, %arg3: memref<8x32xf32, #tpu.memory_space<vmem>>, %arg4: memref<8x32xf32, #tpu.memory_space<vmem>>, %arg5: memref<8x32xf32, #tpu.memory_space<vmem>>, %arg6: memref<8x32xf32, #tpu.memory_space<vmem>>, %arg7: memref<8x32xf32, #tpu.memory_space<vmem>>, %arg8: memref<1x1xf32, #tpu.memory_space<vmem>>, %arg9: memref<8x1xf32, #tpu.memory_space<vmem>>, %arg10: memref<8x1xf32, #tpu.memory_space<vmem>>, %arg11: memref<8x1xf32, #tpu.memory_space<vmem>>, %arg12: memref<1x1x8xf32, #tpu.memory_space<vmem>>, %arg13: memref<1x1x8xf32, #tpu.memory_space<vmem>>, %arg14: memref<1x1x8xf32, #tpu.memory_space<vmem>>, %arg15: memref<1x1x8xf32, #tpu.memory_space<vmem>>, %arg16: memref<1x1xf32, #tpu.memory_space<vmem>>) attributes {dimension_semantics = [#tpu.dimension_semantics<arbitrary>, #tpu.dimension_semantics<arbitrary>], iteration_bounds = array<i64: 1, 1>, scalar_prefetch = 0 : i64, scratch_operands = 8 : i64, tpu.core_type = #tpu.core_type<tc>, window_params = [{transform_indices = @transform_0, window_bounds = array<i64: 1, 1>}, {transform_indices = @transform_1, window_bounds = array<i64: 8, 32>}, {transform_indices = @transform_2, window_bounds = array<i64: 8, 32>}, {transform_indices = @transform_3, window_bounds = array<i64: 8, 32>}, {transform_indices = @transform_4, window_bounds = array<i64: 8, 32>}, {transform_indices = @transform_5, window_bounds = array<i64: 8, 32>}, {pipeline_mode = #tpu.pipeline_mode<synchronous>, transform_indices = @transform_6, window_bounds = array<i64: 1, 1>}]} {
    %c0_i32 = arith.constant 0 : i32
    %0 = arith.cmpi eq, %arg0, %c0_i32 : i32
    %c0_i32_0 = arith.constant 0 : i32
    %1 = arith.cmpi eq, %arg1, %c0_i32_0 : i32
    %2 = arith.andi %0, %1 : i1
    %3 = arith.extui %2 : i1 to i32
    %c0_i32_1 = arith.constant 0 : i32
    %4 = arith.cmpi ne, %3, %c0_i32_1 : i32
    scf.if %4 {
      %cst_53 = arith.constant 0.000000e+00 : f32
      %105 = vector.broadcast %cst_53 : f32 to vector<1x1xf32>
      %c0_54 = arith.constant 0 : index
      %c0_55 = arith.constant 0 : index
      %106 = vector.load %arg16[%c0_54, %c0_55] : memref<1x1xf32, #tpu.memory_space<vmem>>, vector<1x1xf32>
      tpu.vector_store %arg16[%c0_54, %c0_55], %105 {strides = array<i32>} : memref<1x1xf32, #tpu.memory_space<vmem>>, vector<1x1xf32>,
      %cst_56 = arith.constant 0xFF800000 : f32
      %107 = vector.broadcast %cst_56 : f32 to vector<1x1x8xf32>
      %c0_57 = arith.constant 0 : index
      %c0_58 = arith.constant 0 : index
      %c0_59 = arith.constant 0 : index
      %108 = vector.load %arg12[%c0_57, %c0_58, %c0_59] : memref<1x1x8xf32, #tpu.memory_space<vmem>>, vector<1x1x8xf32>
      tpu.vector_store %arg12[%c0_57, %c0_58, %c0_59], %107 {strides = array<i32>} : memref<1x1x8xf32, #tpu.memory_space<vmem>>, vector<1x1x8xf32>,
      %cst_60 = arith.constant 0xFF800000 : f32
      %109 = vector.broadcast %cst_60 : f32 to vector<1x1x8xf32>
      %c0_61 = arith.constant 0 : index
      %c0_62 = arith.constant 0 : index
      %c0_63 = arith.constant 0 : index
      %110 = vector.load %arg14[%c0_61, %c0_62, %c0_63] : memref<1x1x8xf32, #tpu.memory_space<vmem>>, vector<1x1x8xf32>
      tpu.vector_store %arg14[%c0_61, %c0_62, %c0_63], %109 {strides = array<i32>} : memref<1x1x8xf32, #tpu.memory_space<vmem>>, vector<1x1x8xf32>,
      %cst_64 = arith.constant 0.000000e+00 : f32
      %111 = vector.broadcast %cst_64 : f32 to vector<1x1x8xf32>
      %c0_65 = arith.constant 0 : index
      %c0_66 = arith.constant 0 : index
      %c0_67 = arith.constant 0 : index
      %112 = vector.load %arg13[%c0_65, %c0_66, %c0_67] : memref<1x1x8xf32, #tpu.memory_space<vmem>>, vector<1x1x8xf32>
      tpu.vector_store %arg13[%c0_65, %c0_66, %c0_67], %111 {strides = array<i32>} : memref<1x1x8xf32, #tpu.memory_space<vmem>>, vector<1x1x8xf32>,
      %cst_68 = arith.constant 0.000000e+00 : f32
      %113 = vector.broadcast %cst_68 : f32 to vector<1x1x8xf32>
      %c0_69 = arith.constant 0 : index
      %c0_70 = arith.constant 0 : index
      %c0_71 = arith.constant 0 : index
      %114 = vector.load %arg15[%c0_69, %c0_70, %c0_71] : memref<1x1x8xf32, #tpu.memory_space<vmem>>, vector<1x1x8xf32>
      tpu.vector_store %arg15[%c0_69, %c0_70, %c0_71], %113 {strides = array<i32>} : memref<1x1x8xf32, #tpu.memory_space<vmem>>, vector<1x1x8xf32>,
    } else {
    }
    %c0_i32_2 = arith.constant 0 : i32
    %5 = arith.cmpi eq, %arg1, %c0_i32_2 : i32
    %6 = arith.extui %5 : i1 to i32
    %c0_i32_3 = arith.constant 0 : i32
    %7 = arith.cmpi ne, %6, %c0_i32_3 : i32
    scf.if %7 {
      %cst_53 = arith.constant 0xFF800000 : f32
      %105 = vector.broadcast %cst_53 : f32 to vector<8x1xf32>
      %c0_54 = arith.constant 0 : index
      %c0_55 = arith.constant 0 : index
      %106 = vector.load %arg9[%c0_54, %c0_55] : memref<8x1xf32, #tpu.memory_space<vmem>>, vector<8x1xf32>
      tpu.vector_store %arg9[%c0_54, %c0_55], %105 {strides = array<i32>} : memref<8x1xf32, #tpu.memory_space<vmem>>, vector<8x1xf32>,
      %cst_56 = arith.constant 0.000000e+00 : f32
      %107 = vector.broadcast %cst_56 : f32 to vector<8x1xf32>
      %c0_57 = arith.constant 0 : index
      %c0_58 = arith.constant 0 : index
      %108 = vector.load %arg10[%c0_57, %c0_58] : memref<8x1xf32, #tpu.memory_space<vmem>>, vector<8x1xf32>
      tpu.vector_store %arg10[%c0_57, %c0_58], %107 {strides = array<i32>} : memref<8x1xf32, #tpu.memory_space<vmem>>, vector<8x1xf32>,
      %cst_59 = arith.constant 0.000000e+00 : f32
      %109 = vector.broadcast %cst_59 : f32 to vector<8x1xf32>
      %c0_60 = arith.constant 0 : index
      %c0_61 = arith.constant 0 : index
      %110 = vector.load %arg11[%c0_60, %c0_61] : memref<8x1xf32, #tpu.memory_space<vmem>>, vector<8x1xf32>
      tpu.vector_store %arg11[%c0_60, %c0_61], %109 {strides = array<i32>} : memref<8x1xf32, #tpu.memory_space<vmem>>, vector<8x1xf32>,
    } else {
    }
    %c0 = arith.constant 0 : index
    %c0_4 = arith.constant 0 : index
    %8 = memref.load %arg2[%c0, %c0_4] : memref<1x1xf32, #tpu.memory_space<smem>>
    %9 = math.exp %8 : f32
    %c0_5 = arith.constant 0 : index
    %c0_6 = arith.constant 0 : index
    %10 = vector.load %arg3[%c0_5, %c0_6] : memref<8x32xf32, #tpu.memory_space<vmem>>, vector<8x32xf32>
    %11 = vector.broadcast %9 : f32 to vector<8x32xf32>
    %12 = arith.mulf %10, %11 : vector<8x32xf32>
    %c0_7 = arith.constant 0 : index
    %c0_8 = arith.constant 0 : index
    %13 = vector.load %arg4[%c0_7, %c0_8] : memref<8x32xf32, #tpu.memory_space<vmem>>, vector<8x32xf32>
    %cst = arith.constant dense<0.000000e+00> : vector<8x8xf32>
    %14 = tpu.matmul %12, %13, %cst {dimension_numbers = #tpu.dot_dimension_numbers<[1], [1], [0], [0], [0, 0, 1, 0], [], []>} : vector<8x32xf32>, vector<8x32xf32>, vector<8x8xf32> -> vector<8x8xf32>
    %c0_9 = arith.constant 0 : index
    %c0_10 = arith.constant 0 : index
    %15 = vector.load %arg5[%c0_9, %c0_10] : memref<8x32xf32, #tpu.memory_space<vmem>>, vector<8x32xf32>
    %cst_11 = arith.constant dense<0.000000e+00> : vector<8x8xf32>
    %16 = tpu.matmul %12, %15, %cst_11 {dimension_numbers = #tpu.dot_dimension_numbers<[1], [1], [0], [0], [0, 0, 1, 0], [], []>} : vector<8x32xf32>, vector<8x32xf32>, vector<8x8xf32> -> vector<8x8xf32>
    %cst_12 = arith.constant dense<0xFF800000> : vector<8xf32>
    %17 = vector.multi_reduction <maximumf>, %14, %cst_12 [0] : vector<8x8xf32> to vector<8xf32>
    %18 = vector.shape_cast %17 : vector<8xf32> to vector<1x8xf32>
    %19 = arith.index_cast %arg1 : i32 to index
    %c0_13 = arith.constant 0 : index
    %c0_14 = arith.constant 0 : index
    %20 = vector.load %arg12[%19, %c0_13, %c0_14] : memref<1x1x8xf32, #tpu.memory_space<vmem>>, vector<1x1x8xf32>
    %21 = vector.shape_cast %20 : vector<1x1x8xf32> to vector<1x8xf32>
    %22 = arith.maximumf %21, %18 : vector<1x8xf32>
    %23 = arith.index_cast %arg1 : i32 to index
    %c0_15 = arith.constant 0 : index
    %c0_16 = arith.constant 0 : index
    %24 = vector.load %arg13[%23, %c0_15, %c0_16] : memref<1x1x8xf32, #tpu.memory_space<vmem>>, vector<1x1x8xf32>
    %25 = vector.shape_cast %24 : vector<1x1x8xf32> to vector<1x8xf32>
    %26 = arith.subf %21, %22 : vector<1x8xf32>
    %27 = math.exp %26 : vector<1x8xf32>
    %28 = arith.mulf %25, %27 : vector<1x8xf32>
    %29 = vector.broadcast %22 : vector<1x8xf32> to vector<8x8xf32>
    %30 = arith.subf %14, %29 : vector<8x8xf32>
    %31 = math.exp %30 : vector<8x8xf32>
    %cst_17 = arith.constant dense<0.000000e+00> : vector<8xf32>
    %32 = vector.multi_reduction <add>, %31, %cst_17 [0] : vector<8x8xf32> to vector<8xf32>
    %33 = vector.shape_cast %32 : vector<8xf32> to vector<1x8xf32>
    %34 = arith.addf %28, %33 : vector<1x8xf32>
    %35 = arith.index_cast %arg1 : i32 to index
    %c0_18 = arith.constant 0 : index
    %c0_19 = arith.constant 0 : index
    %36 = vector.load %arg13[%35, %c0_18, %c0_19] : memref<1x1x8xf32, #tpu.memory_space<vmem>>, vector<1x1x8xf32>
    %37 = vector.shape_cast %36 : vector<1x1x8xf32> to vector<1x8xf32>
    %38 = vector.shape_cast %34 : vector<1x8xf32> to vector<1x1x8xf32>
    tpu.vector_store %arg13[%35, %c0_18, %c0_19], %38 {strides = array<i32>} : memref<1x1x8xf32, #tpu.memory_space<vmem>>, vector<1x1x8xf32>,
    %39 = arith.index_cast %arg1 : i32 to index
    %c0_20 = arith.constant 0 : index
    %c0_21 = arith.constant 0 : index
    %40 = vector.load %arg12[%39, %c0_20, %c0_21] : memref<1x1x8xf32, #tpu.memory_space<vmem>>, vector<1x1x8xf32>
    %41 = vector.shape_cast %40 : vector<1x1x8xf32> to vector<1x8xf32>
    %42 = vector.shape_cast %22 : vector<1x8xf32> to vector<1x1x8xf32>
    tpu.vector_store %arg12[%39, %c0_20, %c0_21], %42 {strides = array<i32>} : memref<1x1x8xf32, #tpu.memory_space<vmem>>, vector<1x1x8xf32>,
    %cst_22 = arith.constant dense<0xFF800000> : vector<8xf32>
    %43 = vector.multi_reduction <maximumf>, %16, %cst_22 [0] : vector<8x8xf32> to vector<8xf32>
    %44 = vector.shape_cast %43 : vector<8xf32> to vector<1x8xf32>
    %45 = arith.index_cast %arg1 : i32 to index
    %c0_23 = arith.constant 0 : index
    %c0_24 = arith.constant 0 : index
    %46 = vector.load %arg14[%45, %c0_23, %c0_24] : memref<1x1x8xf32, #tpu.memory_space<vmem>>, vector<1x1x8xf32>
    %47 = vector.shape_cast %46 : vector<1x1x8xf32> to vector<1x8xf32>
    %48 = arith.maximumf %47, %44 : vector<1x8xf32>
    %49 = arith.index_cast %arg1 : i32 to index
    %c0_25 = arith.constant 0 : index
    %c0_26 = arith.constant 0 : index
    %50 = vector.load %arg15[%49, %c0_25, %c0_26] : memref<1x1x8xf32, #tpu.memory_space<vmem>>, vector<1x1x8xf32>
    %51 = vector.shape_cast %50 : vector<1x1x8xf32> to vector<1x8xf32>
    %52 = arith.subf %47, %48 : vector<1x8xf32>
    %53 = math.exp %52 : vector<1x8xf32>
    %54 = arith.mulf %51, %53 : vector<1x8xf32>
    %55 = vector.broadcast %48 : vector<1x8xf32> to vector<8x8xf32>
    %56 = arith.subf %16, %55 : vector<8x8xf32>
    %57 = math.exp %56 : vector<8x8xf32>
    %cst_27 = arith.constant dense<0.000000e+00> : vector<8xf32>
    %58 = vector.multi_reduction <add>, %57, %cst_27 [0] : vector<8x8xf32> to vector<8xf32>
    %59 = vector.shape_cast %58 : vector<8xf32> to vector<1x8xf32>
    %60 = arith.addf %54, %59 : vector<1x8xf32>
    %61 = arith.index_cast %arg1 : i32 to index
    %c0_28 = arith.constant 0 : index
    %c0_29 = arith.constant 0 : index
    %62 = vector.load %arg15[%61, %c0_28, %c0_29] : memref<1x1x8xf32, #tpu.memory_space<vmem>>, vector<1x1x8xf32>
    %63 = vector.shape_cast %62 : vector<1x1x8xf32> to vector<1x8xf32>
    %64 = vector.shape_cast %60 : vector<1x8xf32> to vector<1x1x8xf32>
    tpu.vector_store %arg15[%61, %c0_28, %c0_29], %64 {strides = array<i32>} : memref<1x1x8xf32, #tpu.memory_space<vmem>>, vector<1x1x8xf32>,
    %65 = arith.index_cast %arg1 : i32 to index
    %c0_30 = arith.constant 0 : index
    %c0_31 = arith.constant 0 : index
    %66 = vector.load %arg14[%65, %c0_30, %c0_31] : memref<1x1x8xf32, #tpu.memory_space<vmem>>, vector<1x1x8xf32>
    %67 = vector.shape_cast %66 : vector<1x1x8xf32> to vector<1x8xf32>
    %68 = vector.shape_cast %48 : vector<1x8xf32> to vector<1x1x8xf32>
    tpu.vector_store %arg14[%65, %c0_30, %c0_31], %68 {strides = array<i32>} : memref<1x1x8xf32, #tpu.memory_space<vmem>>, vector<1x1x8xf32>,
    %cst_32 = arith.constant dense<0xFF800000> : vector<8xf32>
    %69 = vector.multi_reduction <maximumf>, %14, %cst_32 [1] : vector<8x8xf32> to vector<8xf32>
    %70 = vector.shape_cast %69 : vector<8xf32> to vector<8x1xf32>
    %cst_33 = arith.constant dense<0xFF800000> : vector<8xf32>
    %71 = vector.multi_reduction <maximumf>, %16, %cst_33 [1] : vector<8x8xf32> to vector<8xf32>
    %72 = vector.shape_cast %71 : vector<8xf32> to vector<8x1xf32>
    %73 = arith.maximumf %70, %72 : vector<8x1xf32>
    %c0_34 = arith.constant 0 : index
    %c0_35 = arith.constant 0 : index
    %74 = vector.load %arg9[%c0_34, %c0_35] : memref<8x1xf32, #tpu.memory_space<vmem>>, vector<8x1xf32>
    %75 = arith.maximumf %74, %73 : vector<8x1xf32>
    %76 = arith.subf %74, %75 : vector<8x1xf32>
    %77 = math.exp %76 : vector<8x1xf32>
    %c0_36 = arith.constant 0 : index
    %c0_37 = arith.constant 0 : index
    %78 = vector.load %arg10[%c0_36, %c0_37] : memref<8x1xf32, #tpu.memory_space<vmem>>, vector<8x1xf32>
    %79 = arith.mulf %78, %77 : vector<8x1xf32>
    %80 = vector.broadcast %75 : vector<8x1xf32> to vector<8x8xf32>
    %81 = arith.subf %14, %80 : vector<8x8xf32>
    %82 = math.exp %81 : vector<8x8xf32>
    %cst_38 = arith.constant dense<0.000000e+00> : vector<8xf32>
    %83 = vector.multi_reduction <add>, %82, %cst_38 [1] : vector<8x8xf32> to vector<8xf32>
    %84 = vector.shape_cast %83 : vector<8xf32> to vector<8x1xf32>
    %85 = arith.addf %79, %84 : vector<8x1xf32>
    %c0_39 = arith.constant 0 : index
    %c0_40 = arith.constant 0 : index
    %86 = vector.load %arg10[%c0_39, %c0_40] : memref<8x1xf32, #tpu.memory_space<vmem>>, vector<8x1xf32>
    tpu.vector_store %arg10[%c0_39, %c0_40], %85 {strides = array<i32>} : memref<8x1xf32, #tpu.memory_space<vmem>>, vector<8x1xf32>,
    %c0_41 = arith.constant 0 : index
    %c0_42 = arith.constant 0 : index
    %87 = vector.load %arg11[%c0_41, %c0_42] : memref<8x1xf32, #tpu.memory_space<vmem>>, vector<8x1xf32>
    %88 = arith.mulf %87, %77 : vector<8x1xf32>
    %89 = vector.broadcast %75 : vector<8x1xf32> to vector<8x8xf32>
    %90 = arith.subf %16, %89 : vector<8x8xf32>
    %91 = math.exp %90 : vector<8x8xf32>
    %cst_43 = arith.constant dense<0.000000e+00> : vector<8xf32>
    %92 = vector.multi_reduction <add>, %91, %cst_43 [1] : vector<8x8xf32> to vector<8xf32>
    %93 = vector.shape_cast %92 : vector<8xf32> to vector<8x1xf32>
    %94 = arith.addf %88, %93 : vector<8x1xf32>
    %c0_44 = arith.constant 0 : index
    %c0_45 = arith.constant 0 : index
    %95 = vector.load %arg11[%c0_44, %c0_45] : memref<8x1xf32, #tpu.memory_space<vmem>>, vector<8x1xf32>
    tpu.vector_store %arg11[%c0_44, %c0_45], %94 {strides = array<i32>} : memref<8x1xf32, #tpu.memory_space<vmem>>, vector<8x1xf32>,
    %c0_46 = arith.constant 0 : index
    %c0_47 = arith.constant 0 : index
    %96 = vector.load %arg9[%c0_46, %c0_47] : memref<8x1xf32, #tpu.memory_space<vmem>>, vector<8x1xf32>
    tpu.vector_store %arg9[%c0_46, %c0_47], %75 {strides = array<i32>} : memref<8x1xf32, #tpu.memory_space<vmem>>, vector<8x1xf32>,
    %c0_i32_48 = arith.constant 0 : i32
    %97 = arith.cmpi eq, %arg1, %c0_i32_48 : i32
    %98 = arith.extui %97 : i1 to i32
    %c0_i32_49 = arith.constant 0 : i32
    %99 = arith.cmpi ne, %98, %c0_i32_49 : i32
    scf.if %99 {
      %c0_53 = arith.constant 0 : index
      %c0_54 = arith.constant 0 : index
      %105 = vector.load %arg6[%c0_53, %c0_54] : memref<8x32xf32, #tpu.memory_space<vmem>>, vector<8x32xf32>
      %106 = arith.mulf %12, %105 : vector<8x32xf32>
      %cst_55 = arith.constant dense<0.000000e+00> : vector<8xf32>
      %107 = vector.multi_reduction <add>, %106, %cst_55 [1] : vector<8x32xf32> to vector<8xf32>
      %108 = vector.shape_cast %107 : vector<8xf32> to vector<8x1xf32>
      %c0_56 = arith.constant 0 : index
      %c0_57 = arith.constant 0 : index
      %109 = vector.load %arg7[%c0_56, %c0_57] : memref<8x32xf32, #tpu.memory_space<vmem>>, vector<8x32xf32>
      %110 = arith.mulf %12, %109 : vector<8x32xf32>
      %cst_58 = arith.constant dense<0.000000e+00> : vector<8xf32>
      %111 = vector.multi_reduction <add>, %110, %cst_58 [1] : vector<8x32xf32> to vector<8xf32>
      %112 = vector.shape_cast %111 : vector<8xf32> to vector<8x1xf32>
      %c0_59 = arith.constant 0 : index
      %c0_60 = arith.constant 0 : index
      %113 = vector.load %arg9[%c0_59, %c0_60] : memref<8x1xf32, #tpu.memory_space<vmem>>, vector<8x1xf32>
      %c0_61 = arith.constant 0 : index
      %c0_62 = arith.constant 0 : index
      %114 = vector.load %arg10[%c0_61, %c0_62] : memref<8x1xf32, #tpu.memory_space<vmem>>, vector<8x1xf32>
      %c0_63 = arith.constant 0 : index
      %c0_64 = arith.constant 0 : index
      %115 = vector.load %arg11[%c0_63, %c0_64] : memref<8x1xf32, #tpu.memory_space<vmem>>, vector<8x1xf32>
      %116 = arith.addf %114, %115 : vector<8x1xf32>
      %117 = arith.subf %112, %113 : vector<8x1xf32>
      %118 = math.exp %117 : vector<8x1xf32>
      %119 = arith.subf %116, %118 : vector<8x1xf32>
      %120 = math.log %119 : vector<8x1xf32>
      %121 = arith.addf %113, %120 : vector<8x1xf32>
      %122 = arith.subf %108, %113 : vector<8x1xf32>
      %123 = math.exp %122 : vector<8x1xf32>
      %124 = arith.subf %116, %123 : vector<8x1xf32>
      %125 = math.log %124 : vector<8x1xf32>
      %126 = arith.addf %113, %125 : vector<8x1xf32>
      %c0_65 = arith.constant 0 : index
      %c0_66 = arith.constant 0 : index
      %127 = vector.load %arg16[%c0_65, %c0_66] : memref<1x1xf32, #tpu.memory_space<vmem>>, vector<1x1xf32>
      %128 = arith.addf %121, %126 : vector<8x1xf32>
      %129 = arith.addf %108, %112 : vector<8x1xf32>
      %cst_67 = arith.constant 2.000000e+00 : f32
      %130 = vector.broadcast %cst_67 : f32 to vector<8x1xf32>
      %131 = arith.mulf %130, %129 : vector<8x1xf32>
      %132 = arith.subf %128, %131 : vector<8x1xf32>
      %133 = vector.shape_cast %132 : vector<8x1xf32> to vector<1x8x1xf32>
      %cst_68 = arith.constant dense<0.000000e+00> : vector<1xf32>
      %134 = vector.multi_reduction <add>, %133, %cst_68 [1, 2] : vector<1x8x1xf32> to vector<1xf32>
      %135 = vector.shape_cast %134 : vector<1xf32> to vector<1x1x1xf32>
      %136 = vector.extract %135[0, 0, 0] : f32 from vector<1x1x1xf32>
      %137 = vector.broadcast %136 : f32 to vector<1x1xf32>
      %138 = arith.addf %127, %137 : vector<1x1xf32>
      %c0_69 = arith.constant 0 : index
      %c0_70 = arith.constant 0 : index
      %139 = vector.load %arg16[%c0_69, %c0_70] : memref<1x1xf32, #tpu.memory_space<vmem>>, vector<1x1xf32>
      tpu.vector_store %arg16[%c0_69, %c0_70], %138 {strides = array<i32>} : memref<1x1xf32, #tpu.memory_space<vmem>>, vector<1x1xf32>,
    } else {
    }
    %c0_i32_50 = arith.constant 0 : i32
    %100 = arith.cmpi eq, %arg0, %c0_i32_50 : i32
    %c0_i32_51 = arith.constant 0 : i32
    %101 = arith.cmpi eq, %arg1, %c0_i32_51 : i32
    %102 = arith.andi %100, %101 : i1
    %103 = arith.extui %102 : i1 to i32
    %c0_i32_52 = arith.constant 0 : i32
    %104 = arith.cmpi ne, %103, %c0_i32_52 : i32
    scf.if %104 {
      %c0_53 = arith.constant 0 : index
      %c0_54 = arith.constant 0 : index
      %c0_55 = arith.constant 0 : index
      %105 = vector.load %arg12[%c0_53, %c0_54, %c0_55] : memref<1x1x8xf32, #tpu.memory_space<vmem>>, vector<1x1x8xf32>
      %c0_56 = arith.constant 0 : index
      %c0_57 = arith.constant 0 : index
      %c0_58 = arith.constant 0 : index
      %106 = vector.load %arg13[%c0_56, %c0_57, %c0_58] : memref<1x1x8xf32, #tpu.memory_space<vmem>>, vector<1x1x8xf32>
      %107 = math.log %106 : vector<1x1x8xf32>
      %108 = arith.addf %105, %107 : vector<1x1x8xf32>
      %109 = vector.shape_cast %108 : vector<1x1x8xf32> to vector<1x1x1x8xf32>
      %cst_59 = arith.constant dense<0.000000e+00> : vector<1xf32>
      %110 = vector.multi_reduction <add>, %109, %cst_59 [1, 2, 3] : vector<1x1x1x8xf32> to vector<1xf32>
      %111 = vector.shape_cast %110 : vector<1xf32> to vector<1x1x1x1xf32>
      %112 = vector.extract %111[0, 0, 0, 0] : f32 from vector<1x1x1x1xf32>
      %c0_60 = arith.constant 0 : index
      %c0_61 = arith.constant 0 : index
      %c0_62 = arith.constant 0 : index
      %113 = vector.load %arg14[%c0_60, %c0_61, %c0_62] : memref<1x1x8xf32, #tpu.memory_space<vmem>>, vector<1x1x8xf32>
      %c0_63 = arith.constant 0 : index
      %c0_64 = arith.constant 0 : index
      %c0_65 = arith.constant 0 : index
      %114 = vector.load %arg15[%c0_63, %c0_64, %c0_65] : memref<1x1x8xf32, #tpu.memory_space<vmem>>, vector<1x1x8xf32>
      %115 = math.log %114 : vector<1x1x8xf32>
      %116 = arith.addf %113, %115 : vector<1x1x8xf32>
      %117 = vector.shape_cast %116 : vector<1x1x8xf32> to vector<1x1x1x8xf32>
      %cst_66 = arith.constant dense<0.000000e+00> : vector<1xf32>
      %118 = vector.multi_reduction <add>, %117, %cst_66 [1, 2, 3] : vector<1x1x1x8xf32> to vector<1xf32>
      %119 = vector.shape_cast %118 : vector<1xf32> to vector<1x1x1x1xf32>
      %120 = vector.extract %119[0, 0, 0, 0] : f32 from vector<1x1x1x1xf32>
      %c0_67 = arith.constant 0 : index
      %c0_68 = arith.constant 0 : index
      %121 = vector.load %arg16[%c0_67, %c0_68] : memref<1x1xf32, #tpu.memory_space<vmem>>, vector<1x1xf32>
      %122 = vector.broadcast %112 : f32 to vector<1x1xf32>
      %123 = arith.addf %121, %122 : vector<1x1xf32>
      %124 = vector.broadcast %120 : f32 to vector<1x1xf32>
      %125 = arith.addf %123, %124 : vector<1x1xf32>
      %cst_69 = arith.constant 1.250000e-01 : f32
      %126 = vector.broadcast %cst_69 : f32 to vector<1x1xf32>
      %127 = arith.mulf %125, %126 : vector<1x1xf32>
      %c0_70 = arith.constant 0 : index
      %c0_71 = arith.constant 0 : index
      %128 = vector.load %arg8[%c0_70, %c0_71] : memref<1x1xf32, #tpu.memory_space<vmem>>, vector<1x1xf32>
      tpu.vector_store %arg8[%c0_70, %c0_71], %127 {strides = array<i32>} : memref<1x1xf32, #tpu.memory_space<vmem>>, vector<1x1xf32>,
    } else {
    }
    return
  }
  func.func @transform_0(%arg0: i32, %arg1: i32) -> (i32, i32) {
    %c0_i32 = arith.constant 0 : i32
    %c0_i32_0 = arith.constant 0 : i32
    %c0_i32_1 = arith.constant 0 : i32
    return %c0_i32, %c0_i32_0 : i32, i32
  }
  func.func @transform_1(%arg0: i32, %arg1: i32) -> (i32, i32) {
    %c0_i32 = arith.constant 0 : i32
    %c0_i32_0 = arith.constant 0 : i32
    return %arg0, %c0_i32 : i32, i32
  }
  func.func @transform_2(%arg0: i32, %arg1: i32) -> (i32, i32) {
    %c0_i32 = arith.constant 0 : i32
    %c0_i32_0 = arith.constant 0 : i32
    return %arg1, %c0_i32 : i32, i32
  }
  func.func @transform_3(%arg0: i32, %arg1: i32) -> (i32, i32) {
    %c0_i32 = arith.constant 0 : i32
    %c0_i32_0 = arith.constant 0 : i32
    return %arg1, %c0_i32 : i32, i32
  }
  func.func @transform_4(%arg0: i32, %arg1: i32) -> (i32, i32) {
    %c0_i32 = arith.constant 0 : i32
    %c0_i32_0 = arith.constant 0 : i32
    return %arg0, %c0_i32 : i32, i32
  }
  func.func @transform_5(%arg0: i32, %arg1: i32) -> (i32, i32) {
    %c0_i32 = arith.constant 0 : i32
    %c0_i32_0 = arith.constant 0 : i32
    return %arg0, %c0_i32 : i32, i32
  }
  func.func @transform_6(%arg0: i32, %arg1: i32) -> (i32, i32) {
    %c0_i32 = arith.constant 0 : i32
    %c0_i32_0 = arith.constant 0 : i32
    %c0_i32_1 = arith.constant 0 : i32
    return %c0_i32, %c0_i32_0 : i32, i32
  }
}

</mosaic_0001>

<bundles_post_ra>
// kernel: tpu_custom_call.1
= control target key start
LH: loop header
LB: loop body
LE: loop exit
PB: predicated region body
PF: predicated region fallthrough
CT: control target
= control target key end

     0   :  { %12 = vsyncpa [#allocation12], 0  ;;  %s756_s0 = inlined_call_operand.<no memory space> [shape: f32[1,1], index: 0, kind: input, shape index: {}]   ;;  %s757_s1 = inlined_call_operand.hbm [shape: f32[8,32], index: 1, kind: input, shape index: {}]   ;;  %s758_s2 = inlined_call_operand.hbm [shape: f32[8,32], index: 2, kind: input, shape index: {}]   ;;  %s759_s3 = inlined_call_operand.hbm [shape: f32[8,32], index: 3, kind: input, shape index: {}]   ;;  %s760_s4 = inlined_call_operand.hbm [shape: f32[8,32], index: 4, kind: input, shape index: {}]   ;;  %s761_s5 = inlined_call_operand.vmem [shape: f32[8,32], index: 5, kind: input, shape index: {}]   ;;  %s762_s6 = inlined_call_operand.hbm [shape: f32[1,1], index: 6, kind: output, shape index: {}]  }
   0x1   :  { %13 = vsyncpa [#allocation15], 0 }
   0x2   :  { %14 = vsyncpa [#allocation18], 0 }
   0x3   :  { %15 = vsyncpa [#allocation13], 0  ;;  %s637_s21 = smov [#allocation14]   ;;  %s638_s23 = smov [#allocation11]  }
   0x4   :  { %s34_s22 = sshll.u32 %s637_s21, 4  ;;  %s24_s24 = sshll.u32 %s638_s23, 4  ;;  %s35_s22 = int_to_ptr.vmem [resolvable:$true] %s34_s22  ;;  %s25_s24 = int_to_ptr.vmem [resolvable:$true] %s24_s24 }
   0x5   :  { %s537_s25 = scalar_lea.vmem %s35_s22, 128  ;;  %p542_p1 = scmp.lt.s32.totalorder %s35_s22, %s35_s22 }
   0x6   :  { %p538_p0 = scmp.ne.s32.totalorder %s35_s22, %s537_s25  ;;  %p543_p2 = scmp.lt.s32.totalorder %s537_s25, %s537_s25 }
   0x8   :  { %p544_p3 = por %p543_p2, %p542_p1 }
   0xa   :  { %p545_p4 = pnand %p544_p3, %p538_p0 }
   0xc   :  { %548 = shalt.err (!%p545_p4)
}
   0xd   :  { %37 = dma.hbm_to_vmem [thread:$0]  %s758_s2, 128, %s35_s22, [#allocation15]  }
   0xe   :  { %s557_s28 = scalar_lea.vmem %s25_s24, 128  ;;  %p562_p6 = scmp.lt.s32.totalorder %s25_s24, %s25_s24 }
   0xf   :  { %p558_p5 = scmp.ne.s32.totalorder %s25_s24, %s557_s28  ;;  %p563_p7 = scmp.lt.s32.totalorder %s557_s28, %s557_s28 }
  0x11   :  { %p564_p8 = por %p563_p7, %p562_p6 }
  0x13   :  { %p565_p9 = pnand %p564_p8, %p558_p5 }
  0x15   :  { %568 = shalt.err (!%p565_p9)
}
  0x16   :  { %27 = dma.hbm_to_vmem [thread:$0]  %s757_s1, 128, %s25_s24, [#allocation12]  }
  0x17   :  { %s639_s7 = smov [#allocation16]   ;;  %s640_s9 = smov [#allocation17]  }
  0x18   :  { %s44_s8 = sshll.u32 %s639_s7, 4  ;;  %s54_s10 = sshll.u32 %s640_s9, 4  ;;  %s45_s8 = int_to_ptr.vmem [resolvable:$true] %s44_s8  ;;  %s55_s10 = int_to_ptr.vmem [resolvable:$true] %s54_s10 }
  0x19   :  { %s577_s11 = scalar_lea.vmem %s45_s8, 128  ;;  %p582_p11 = scmp.lt.s32.totalorder %s45_s8, %s45_s8 }
  0x1a   :  { %p578_p10 = scmp.ne.s32.totalorder %s45_s8, %s577_s11  ;;  %p583_p12 = scmp.lt.s32.totalorder %s577_s11, %s577_s11 }
  0x1c   :  { %p584_p13 = por %p583_p12, %p582_p11 }
  0x1e   :  { %p585_p0 = pnand %p584_p13, %p578_p10 }
  0x20   :  { %588 = shalt.err (!%p585_p0)
}
  0x21   :  { %47 = dma.hbm_to_vmem [thread:$0]  %s759_s3, 128, %s45_s8, [#allocation15]  }
  0x22   :  { %s597_s13 = scalar_lea.vmem %s55_s10, 128  ;;  %p602_p2 = scmp.lt.s32.totalorder %s55_s10, %s55_s10 }
  0x23   :  { %p598_p1 = scmp.ne.s32.totalorder %s55_s10, %s597_s13  ;;  %p603_p3 = scmp.lt.s32.totalorder %s597_s13, %s597_s13 }
  0x25   :  { %p604_p4 = por %p603_p3, %p602_p2 }
  0x27   :  { %p605_p5 = pnand %p604_p4, %p598_p1 }
  0x29   :  { %608 = shalt.err (!%p605_p5)
}
  0x2a   :  { %57 = dma.hbm_to_vmem [thread:$0]  %s760_s4, 128, %s55_s10, [#allocation18]  }
  0x2b   :  { %629 = dma.done.wait [#allocation12], 128  }
  0x2c   :  { %630 = vsyncadd [#allocation12], 4294967168 }
  0x2d   :  { %631 = dma.done.wait [#allocation15], 256  }
  0x2e   :  { %632 = vsyncadd [#allocation15], 4294967040  ;;  %v93_v0 = vstv %s756_s0 }
  0x2f   :  { %633 = dma.done.wait [#allocation18], 128  }
  0x30   :  { %634 = vsyncadd [#allocation18], 4294967168  ;;  %v94_v1 = vmul.f32 1.442695, %v93_v0  ;;  %v641_v2 = vmov 0.0   ;;  %vm642_vm0 = vmmov 0   ;;  %v268_v24 = vlaneseq }
  0x31   :  { %472 = vmatprep.subr.mxu0 %v641_v2  ;;  %477 = vmatprep.subr.mxu1 %v641_v2  ;;  %vm101_vm1 = vcmask 261120   ;;  %v100_v3 = vld [vmem:[#allocation14] sm:$0xff]  ;;  %v178_v4 = vld [vmem:[#allocation16] sm:$0xff]  ;;  %v97_v6 = vld [vmem:[#allocation11] sm:$0xff]  ;;  %vm80_vm2 = vcmask 57344   ;;  %v643_v15 = vmov -inf  }
  0x32   :  { %474 = vmatprep.mubr.msk.f32.mxu0 %vm642_vm0, %v641_v2  ;;  %479 = vmatprep.mubr.msk.f32.mxu1 %vm642_vm0, %v641_v2  ;;  %501 = vpow2.f32 %v94_v1  ;;  %v365_v8 = vld [vmem:[%s761_s5] sm:$0xff]  ;;  %v360_v9 = vld [vmem:[#allocation17] sm:$0xff]  ;;  %81 = vst.msk [vmem:[#allocation5] sm:$0x1] %vm80_vm2, %v643_v15  ;;  %83 = vst.msk [vmem:[#allocation6] sm:$0x1] %vm80_vm2, %v641_v2 }
  0x33   :  { %473 = vmatpush3.xpose.msk.msra.mxu0 %vm101_vm1, %v100_v3  ;;  %478 = vmatpush3.xpose.msk.msra.mxu1 %vm101_vm1, %v178_v4  ;;  %82 = vst.msk [vmem:[#allocation7] sm:$0x1] %vm80_vm2, %v643_v15  ;;  %84 = vst.msk [vmem:[#allocation8] sm:$0x1] %vm80_vm2, %v641_v2  ;;  %vm252_vm3 = vcmask 64512   ;;  %v269_v29 = vshrl.u32 %v268_v24, 7 }
  0x34   :  { %vm88_vm4 = vcmask 7168   ;;  %v644_v47 = vmov 0   ;;  %vm78_vm5 = vcmask 0   ;;  %s645_s19 = smov [#allocation19]  }
  0x35   :  { %89 = vst.msk [vmem:[#allocation2] sm:$0xff] %vm88_vm4, %v643_v15  ;;  %90 = vst.msk [vmem:[#allocation3] sm:$0xff] %vm88_vm4, %v641_v2  ;;  %v270_v36 = vsub.s32 0, %v269_v29  ;;  %499 = vset.pattern.permute.xlu1 %v644_v47  ;;  %500 = vset.pattern.permute.xlu0 %v644_v47  ;;  %s453_s20 = sshll.u32 %s645_s19, 4  ;;  %s454_s20 = int_to_ptr.vmem [resolvable:$true] %s453_s20 }
  0x36   :  { %91 = vst.msk [vmem:[#allocation4] sm:$0xff] %vm88_vm4, %v641_v2  ;;  %s609_s21 = scalar_lea.vmem %s454_s20, 16  ;;  %s613_s22 = scalar_lea.vmem %s454_s20, 32 }
  0x37   :  { %79 = vst.msk [vmem:[#allocation9] sm:$0x1] %vm78_vm5, %v641_v2  ;;  %p610_p6 = scmp.ne.s32.totalorder %s454_s20, %s609_s21  ;;  %p614_p7 = scmp.lt.s32.totalorder %s454_s20, %s454_s20 }
  0x38   :  { %p615_p8 = scmp.lt.s32.totalorder %s613_s22, %s609_s21 }
  0x39   :  { %v260_v34 = vld [vmem:[#allocation5] sm:$0x1]  ;;  %v262_v0 = vld [vmem:[#allocation6] sm:$0x1] }
  0x3a   :  { %v294_v35 = vld [vmem:[#allocation7] sm:$0x1]  ;;  %p616_p9 = por %p615_p8, %p614_p7 }
  0x3c   :  { %p617_p10 = pnand %p616_p9, %p610_p6 }
  0x3f   :  { %v502_v5 = vpop.eup %501 }
  0x40   :  { %482 = vpush %v502_v5  ;;  %v296_v5 = vld [vmem:[#allocation8] sm:$0x1] }
  0x71   :  { %s483_s0 = spop %482 }
  0x72   :  { %v98_v7 = vstv %s483_s0 }
  0x73   :  { %v99_v10 = vmul.f32 %v98_v7, %v97_v6 }
  0x75   :  { %475 = vmatmul.mubr.msk.f32.vlgmr.msra.gmra.mxu0 %vm101_vm1, %v99_v10  ;;  %480 = vmatmul.mubr.msk.f32.vlgmr.msra.gmra.mxu1 %vm101_vm1, %v99_v10  ;;  %v366_v11 = vmul.f32 %v365_v8, %v99_v10  ;;  %v361_v12 = vmul.f32 %v360_v9, %v99_v10 }
  0x77   :  { %v367_v13 = vsel %vm101_vm1, %v366_v11, 0.0  ;;  %v709_v14 = vsel %vm101_vm1, %v361_v12, 0.0 }
 0x135   :  { %v717_v16 = vpop.f32.mrf.mxu0  ;;  %v719_v17 = vpop.f32.mrf.mxu1 }
 0x136   :  { %v253_v18 = vsel %vm252_vm3, %v717_v16, -inf  ;;  %v287_v19 = vsel %vm252_vm3, %v719_v17, -inf }
 0x137   :  { %v481_v20 = vpop.f32.mrf.mxu1  ;;  %320 = vmax.xlane.f32.xlu0 %v253_v18  ;;  %v254_v21 = vrot.slane %v253_v18, 4  ;;  %v476_v22 = vpop.f32.mrf.mxu0  ;;  %v288_v23 = vrot.slane %v287_v19, 4 }
 0x139   :  { %v255_v25 = vmax.f32 %v253_v18, %v254_v21  ;;  %v289_v26 = vmax.f32 %v287_v19, %v288_v23  ;;  %v325_v18 = vld [vmem:[#allocation2] sm:$0xff] }
 0x13b   :  { %v256_v27 = vrot.slane %v255_v25, 2  ;;  %v290_v28 = vrot.slane %v289_v26, 2  ;;  %322 = vmax.xlane.f32.xlu0 %v287_v19 }
 0x13d   :  { %v257_v30 = vmax.f32 %v255_v25, %v256_v27  ;;  %v291_v31 = vmax.f32 %v289_v26, %v290_v28 }
 0x13f   :  { %v258_v32 = vrot.slane %v257_v30, 1  ;;  %v292_v33 = vrot.slane %v291_v31, 1  ;;  %368 = vadd.xlane.f32.xlu0 %v367_v13 }
 0x141   :  { %v259_v37 = vmax.f32 %v257_v30, %v258_v32  ;;  %v293_v38 = vmax.f32 %v291_v31, %v292_v33 }
 0x143   :  { %v261_v39 = vmax.f32 %v260_v34, %v259_v37  ;;  %v295_v40 = vmax.f32 %v294_v35, %v293_v38 }
 0x145   :  { %v271_v41 = vrot.slane %v261_v39, %v270_v36  ;;  %286 = vst.msk [vmem:[#allocation5] sm:$0x1] %vm80_vm2, %v261_v39  ;;  %v305_v42 = vrot.slane %v295_v40, %v270_v36  ;;  %319 = vst.msk [vmem:[#allocation7] sm:$0x1] %vm80_vm2, %v295_v40  ;;  %v263_v48 = vsub.f32 %v260_v34, %v261_v39 }
 0x146   :  { %v297_v49 = vsub.f32 %v294_v35, %v295_v40  ;;  %v330_v35 = vld [vmem:[#allocation3] sm:$0xff]  ;;  %v346_v40 = vld [vmem:[#allocation4] sm:$0xff] }
 0x147   :  { %v273_v43 = vsub.f32 %v717_v16, %v271_v41  ;;  %v307_v44 = vsub.f32 %v719_v17, %v305_v42  ;;  %v264_v50 = vmul.f32 1.442695, %v263_v48 }
 0x148   :  { %v298_v51 = vmul.f32 1.442695, %v297_v49 }
 0x149   :  { %v274_v45 = vmul.f32 1.442695, %v273_v43  ;;  %v308_v46 = vmul.f32 1.442695, %v307_v44 }
 0x14b   :  { %503 = vpow2.f32 %v274_v45 }
 0x14c   :  { %505 = vpow2.f32 %v308_v46 }
 0x14d   :  { %507 = vpow2.f32 %v264_v50 }
 0x14e   :  { %509 = vpow2.f32 %v298_v51 }
 0x158   :  { %v504_v52 = vpop.eup %503 }
 0x159   :  { %v506_v53 = vpop.eup %505  ;;  %v276_v54 = vsel %vm252_vm3, %v504_v52, 0.0 }
 0x15a   :  { %v277_v55 = vrot.slane %v276_v54, 4  ;;  %v310_v56 = vsel %vm252_vm3, %v506_v53, 0.0  ;;  %v508_v63 = vpop.eup %507 }
 0x15b   :  { %v311_v57 = vrot.slane %v310_v56, 4  ;;  %v510_v3 = vpop.eup %509  ;;  %v266_v7 = vmul.f32 %v508_v63, %v262_v0 }
 0x15c   :  { %v278_v58 = vadd.f32 %v277_v55, %v276_v54  ;;  %v300_v9 = vmul.f32 %v510_v3, %v296_v5 }
 0x15d   :  { %v312_v59 = vadd.f32 %v311_v57, %v310_v56 }
 0x15e   :  { %v279_v60 = vrot.slane %v278_v58, 2 }
 0x15f   :  { %v313_v61 = vrot.slane %v312_v59, 2 }
 0x160   :  { %v280_v62 = vadd.f32 %v279_v60, %v278_v58 }
 0x161   :  { %v314_v1 = vadd.f32 %v313_v61, %v312_v59 }
 0x162   :  { %v281_v4 = vrot.slane %v280_v62, 1 }
 0x163   :  { %v315_v6 = vrot.slane %v314_v1, 1 }
 0x164   :  { %v282_v8 = vadd.f32 %v281_v4, %v280_v62  ;;  %v409_v4 = vld [vmem:[#allocation5] sm:$0x1] }
 0x165   :  { %v316_v10 = vadd.f32 %v315_v6, %v314_v1 }
 0x166   :  { %v283_v11 = vadd.f32 %v282_v8, %v266_v7  ;;  %v424_v8 = vld [vmem:[#allocation7] sm:$0x1] }
 0x167   :  { %v317_v12 = vadd.f32 %v316_v10, %v300_v9 }
 0x168   :  { %285 = vst.msk [vmem:[#allocation6] sm:$0x1] %vm80_vm2, %v283_v11 }
 0x169   :  { %318 = vst.msk [vmem:[#allocation8] sm:$0x1] %vm80_vm2, %v317_v12 }
 0x16f   :  { %v410_v52 = vld [vmem:[#allocation6] sm:$0x1] }
 0x170   :  { %v425_v53 = vld [vmem:[#allocation8] sm:$0x1] }
 0x1c0   :  { %v321_v13 = vpop.xlane.xlu0 %320 }
 0x1c4   :  { %v323_v15 = vpop.xlane.xlu0 %322 }
 0x1c5   :  { %v324_v19 = vmax.f32 %v321_v13, %v323_v15 }
 0x1c7   :  { %v326_v20 = vmax.f32 %v325_v18, %v324_v19 }
 0x1c8   :  { %v369_v33 = vpop.xlane.xlu0 %368 }
 0x1c9   :  { %v327_v21 = vsub.f32 %v325_v18, %v326_v20  ;;  %356 = vst.msk [vmem:[#allocation2] sm:$0xff] %vm88_vm4, %v326_v20  ;;  %334 = vperm.xlu1 %499, %v326_v20  }
 0x1cb   :  { %v328_v31 = vmul.f32 1.442695, %v327_v21 }
 0x1ed   :  { %363 = vadd.xlane.f32.xlu1 %v709_v14  ;;  %v370_v14 = vld [vmem:[#allocation2] sm:$0xff] }
 0x244   :  { %v335_v22 = vpop.permute.xlu1 %334 }
 0x245   :  { %v337_v23 = vsub.f32 %v717_v16, %v335_v22  ;;  %v348_v24 = vsub.f32 %v719_v17, %v335_v22  ;;  %v374_v16 = vsub.f32 %v369_v33, %v370_v14 }
 0x247   :  { %v338_v25 = vmul.f32 1.442695, %v337_v23  ;;  %v349_v26 = vmul.f32 1.442695, %v348_v24  ;;  %v375_v36 = vmul.f32 1.442695, %v374_v16 }
 0x248   :  { %v388_v16 = vld [vmem:[#allocation9] sm:$0x1] }
 0x249   :  { %511 = vpow2.f32 %v338_v25 }
 0x24a   :  { %513 = vpow2.f32 %v349_v26 }
 0x24b   :  { %515 = vpow2.f32 %v328_v31 }
 0x24c   :  { %517 = vpow2.f32 %v375_v36 }
 0x256   :  { %v512_v27 = vpop.eup %511 }
 0x257   :  { %v340_v28 = vsel %vm252_vm3, %v512_v27, 0.0  ;;  %v514_v29 = vpop.eup %513 }
 0x258   :  { %341 = vadd.xlane.f32.xlu0 %v340_v28  ;;  %v351_v30 = vsel %vm252_vm3, %v514_v29, 0.0  ;;  %v516_v17 = vpop.eup %515 }
 0x259   :  { %v331_v38 = vmul.f32 %v516_v17, %v330_v35  ;;  %v347_v42 = vmul.f32 %v516_v17, %v346_v40  ;;  %v518_v47 = vpop.eup %517 }
 0x25c   :  { %352 = vadd.xlane.f32.xlu0 %v351_v30 }
 0x276   :  { %v364_v32 = vpop.xlane.xlu1 %363 }
 0x277   :  { %v381_v34 = vsub.f32 %v364_v32, %v370_v14  ;;  %v390_v57 = vadd.f32 %v369_v33, %v364_v32 }
 0x279   :  { %v382_v37 = vmul.f32 1.442695, %v381_v34  ;;  %v391_v62 = vmul.f32 2.0, %v390_v57 }
 0x27b   :  { %519 = vpow2.f32 %v382_v37 }
 0x288   :  { %v520_v49 = vpop.eup %519 }
 0x2e1   :  { %v342_v39 = vpop.xlane.xlu0 %341 }
 0x2e2   :  { %v343_v41 = vadd.f32 %v342_v39, %v331_v38 }
 0x2e4   :  { %345 = vst.msk [vmem:[#allocation3] sm:$0xff] %vm88_vm4, %v343_v41 }
 0x2e5   :  { %v353_v43 = vpop.xlane.xlu0 %352 }
 0x2e6   :  { %v354_v44 = vadd.f32 %v353_v43, %v347_v42 }
 0x2e8   :  { %355 = vst.msk [vmem:[#allocation4] sm:$0xff] %vm88_vm4, %v354_v44 }
 0x2eb   :  { %v371_v45 = vld [vmem:[#allocation3] sm:$0xff] }
 0x2ef   :  { %v372_v46 = vld [vmem:[#allocation4] sm:$0xff] }
 0x2f0   :  { %v373_v48 = vadd.f32 %v372_v46, %v371_v45 }
 0x2f2   :  { %v377_v50 = vsub.f32 %v373_v48, %v518_v47  ;;  %v384_v51 = vsub.f32 %v373_v48, %v520_v49 }
 0x2f4   :  { %521 = vlog2.f32 %v377_v50 }
 0x2f5   :  { %523 = vlog2.f32 %v384_v51 }
 0x2f6   :  { %525 = vlog2.f32 %v410_v52 }
 0x2f7   :  { %527 = vlog2.f32 %v425_v53 }
 0x301   :  { %v522_v54 = vpop.eup %521 }
 0x302   :  { %v524_v55 = vpop.eup %523  ;;  %v379_v56 = vmul.f32 0.6931472, %v522_v54 }
 0x303   :  { %v386_v58 = vmul.f32 0.6931472, %v524_v55  ;;  %v526_v59 = vpop.eup %525 }
 0x304   :  { %v380_v60 = vadd.f32 %v379_v56, %v370_v14  ;;  %v412_v0 = vmul.f32 0.6931472, %v526_v59  ;;  %v528_v1 = vpop.eup %527 }
 0x305   :  { %v387_v61 = vadd.f32 %v386_v58, %v370_v14  ;;  %v427_v7 = vmul.f32 0.6931472, %v528_v1 }
 0x306   :  { %v413_v6 = vadd.f32 %v412_v0, %v409_v4 }
 0x307   :  { %v389_v63 = vadd.f32 %v387_v61, %v380_v60  ;;  %v428_v10 = vadd.f32 %v427_v7, %v424_v8 }
 0x308   :  { %v414_v9 = vsel %vm80_vm2, %v413_v6, 0.0 }
 0x309   :  { %v392_v3 = vsub.f32 %v389_v63, %v391_v62  ;;  %v429_v11 = vsel %vm80_vm2, %v428_v10, 0.0 }
 0x30b   :  { %v393_v5 = vsel %vm88_vm4, %v392_v3, 0.0 }
 0x30c   :  { %394 = vadd.xlane.f32.xlu0 %v393_v5 }
 0x310   :  { %415 = vadd.xlane.f32.xlu0 %v414_v9 }
 0x314   :  { %430 = vadd.xlane.f32.xlu0 %v429_v11 }
 0x395   :  { %v395_v12 = vpop.xlane.xlu0 %394 }
 0x396   :  { %v396_v13 = vrot.slane %v395_v12, 4 }
 0x398   :  { %v397_v15 = vadd.f32 %v396_v13, %v395_v12 }
 0x399   :  { %v416_v18 = vpop.xlane.xlu0 %415 }
 0x39a   :  { %v398_v19 = vrot.slane %v397_v15, 2  ;;  %v417_v20 = vrot.slane %v416_v18, 4 }
 0x39c   :  { %v418_v21 = vadd.f32 %v417_v20, %v416_v18  ;;  %v399_v22 = vadd.f32 %v398_v19, %v397_v15 }
 0x39d   :  { %v431_v23 = vpop.xlane.xlu0 %430 }
 0x39e   :  { %v419_v24 = vrot.slane %v418_v21, 2  ;;  %v432_v25 = vrot.slane %v431_v23, 4  ;;  %v400_v26 = vrot.slane %v399_v22, 1 }
 0x3a0   :  { %v433_v27 = vadd.f32 %v432_v25, %v431_v23  ;;  %v401_v28 = vadd.f32 %v400_v26, %v399_v22  ;;  %v420_v29 = vadd.f32 %v419_v24, %v418_v21 }
 0x3a2   :  { %v434_v30 = vrot.slane %v433_v27, 2  ;;  %484 = vpush %v401_v28  ;;  %v421_v31 = vrot.slane %v420_v29, 1 }
 0x3a4   :  { %v435_v14 = vadd.f32 %v434_v30, %v433_v27  ;;  %v422_v2 = vadd.f32 %v421_v31, %v420_v29 }
 0x3a6   :  { %486 = vpush %v422_v2  ;;  %v436_v32 = vrot.slane %v435_v14, 1 }
 0x3a8   :  { %v437_v33 = vadd.f32 %v436_v32, %v435_v14 }
 0x3aa   :  { %488 = vpush %v437_v33 }
 0x3d3   :  { %s485_s5 = spop %484 }
 0x3d4   :  { %v403_v34 = vstv %s485_s5 }
 0x3d5   :  { %v404_v17 = vadd.f32 %v403_v34, %v388_v16 }
 0x3d7   :  { %406 = vst.msk [vmem:[#allocation9] sm:$0x1] %vm78_vm5, %v404_v17  ;;  %s487_s17 = spop %486 }
 0x3d8   :  { %v440_v36 = vstv %s487_s17 }
 0x3db   :  { %s489_s18 = spop %488 }
 0x3dc   :  { %v442_v38 = vstv %s489_s18 }
 0x3de   :  { %v439_v35 = vld [vmem:[#allocation9] sm:$0x1] }
 0x3df   :  { %v441_v37 = vadd.f32 %v440_v36, %v439_v35 }
 0x3e1   :  { %v443_v39 = vadd.f32 %v442_v38, %v441_v37 }
 0x3e3   :  { %v444_v40 = vmul.f32 0.125, %v443_v39 }
 0x3e5   :  { %446 = vst.msk [vmem:[#allocation19] sm:$0x1] %vm78_vm5, %v444_v40 }
 0x3e6   :  { %620 = shalt.err (!%p617_p10)
}
 0x3e7   :  { %456 = dma.vmem_to_hbm [thread:$0]  %s454_s20, 16, %s762_s6, [#allocation13]  }
 0x3e8   :  { %635 = dma.done.wait [#allocation13], 16  }
 0x3e9   :  { %636 = vsyncadd [#allocation13], 4294967280 }
 0x3ea   :  { %460 = vsyncpa [#allocation12], 1 }
 0x3eb   :  { %461 = vsyncpa [#allocation15], 1 }
 0x3ec   :  { %462 = vsyncpa [#allocation18], 1 }
 0x3ed   :  { %463 = vsyncpa [#allocation13], 1 }

</bundles_post_ra>
